<compile_context>
chip_gen: v5e
topology: v5e:2x2
jax: 0.10.0
libtpu: 0.0.40
codegen_flags: <defaults>
</compile_context>

<pallas_src>
import functools

import jax
import jax.numpy as jnp
from jax.experimental import pallas as pl
from jax.experimental.pallas import tpu as pltpu


def _round_up(x, m):
    return ((x + m - 1) // m) * m


def dense_network_kernel(bias_col, ids_ref, w1_ref, w2_ref, o_ref):
    # ids_ref : (Bt, S)   int32   token ids, all < bias_col (== V)
    # w1_ref  : (Vp, Hp)  float32 [emb_table @ w1 | 0 ; b1 | 1 ; 0], Vp = Hp = 128-padded
    # w2_ref  : (Hp, 128) float32 [w2 | 0 ; b2 | 0 ; 0], lane-dense padded output
    # o_ref   : (Bt, 128) float32 logits live in lanes [0:4]
    ids = ids_ref[...]                                      # (Bt, S)
    Bt, S = ids.shape
    Vp = w1_ref.shape[0]                                    # 128-padded vocab+bias

    # Token-count matrix (Bt, Vp): column `bias_col` carries the constant 1 used
    # to fold both biases into the weight matrices.  Accumulate in int32; one
    # int->f32 cast total after the loop.
    vocab_iota = jax.lax.broadcasted_iota(jnp.int32, (Bt, Vp), 1)
    counts_i = (vocab_iota == bias_col).astype(jnp.int32)   # bias slot = 1
    for s in range(S):  # static unroll; S is small -> S VPU compare+adds
        counts_i = counts_i + (ids[:, s:s + 1] == vocab_iota).astype(jnp.int32)
    counts = counts_i.astype(jnp.float32)

    # Layer 1 (gather-sum + dense1 + bias folded into one MXU matmul) + ReLU.
    h = jnp.maximum(
        jnp.dot(counts, w1_ref[...], preferred_element_type=jnp.float32), 0.0
    )                                                       # (Bt, Hp); h[:, H] == relu(1) == 1

    # Layer 2: b2 rides in row H of w2_ref via the bias slot of h.
    o_ref[...] = jnp.dot(h, w2_ref[...], preferred_element_type=jnp.float32)


def fold_params(emb_table, w1, b1, w2, b2, out_pad=128):
    """One-time (inference) weight prep.

    Folds the embedding gather-sum (via token counts), dense1, and both biases
    into two 128-padded MXU-native matrices.  Exact up to fp32 rounding order;
    relies on relu(1) == 1 for the bias passthrough.
    """
    V, _ = emb_table.shape
    H = w1.shape[1]
    O = w2.shape[1]
    V_pad = max(128, _round_up(V + 1, 128))
    H_pad = max(128, _round_up(H + 1, 128))

    w1f = emb_table.astype(jnp.float32) @ w1.astype(jnp.float32)        # (V, H)
    W1_full = jnp.zeros((V_pad, H_pad), jnp.float32)
    W1_full = W1_full.at[:V, :H].set(w1f)
    W1_full = W1_full.at[V, :H].set(b1.reshape(-1))                     # dense1 bias row
    W1_full = W1_full.at[V, H].set(1.0)                                 # bias-slot passthrough

    W2_full = jnp.zeros((H_pad, out_pad), jnp.float32)                  # lane-dense output
    W2_full = W2_full.at[:H, :O].set(w2.astype(jnp.float32))
    W2_full = W2_full.at[H, :O].set(b2.reshape(-1))                     # dense2 bias row
    return W1_full, W2_full, V                                          # bias_col == V


def dense_network_forward(x_ids, W1_full, W2_full, bias_col, num_classes=4):
    """x_ids: (B, S) int32 token indices (values in [0, V))."""
    B, S = x_ids.shape
    V_pad, H_pad = W1_full.shape
    out_pad = W2_full.shape[1]

    # Batch tile: multiple of 8 sublanes, capped at 256 rows/step (native-ish for
    # v6e/v7x's 256-wide MXU, 2x the 128 native of v5e).  Pad B up to Bt.
    Bt = min(256, _round_up(B, 8))
    B_pad = _round_up(B, Bt)
    if B_pad != B:
        x_ids = jnp.pad(x_ids, ((0, B_pad - B), (0, 0)))

    out = pl.pallas_call(
        functools.partial(dense_network_kernel, bias_col),
        out_shape=jax.ShapeDtypeStruct((B_pad, out_pad), jnp.float32),
        grid=(B_pad // Bt,),
        in_specs=[
            pl.BlockSpec((Bt, S), lambda i: (i, 0)),
            pl.BlockSpec((V_pad, H_pad), lambda i: (0, 0)),   # weights resident across steps
            pl.BlockSpec((H_pad, out_pad), lambda i: (0, 0)),
        ],
        out_specs=pl.BlockSpec((Bt, out_pad), lambda i: (i, 0)),
        compiler_params=pltpu.CompilerParams(
            dimension_semantics=("parallel",)),
    )(x_ids, W1_full, W2_full)
    # Slice back to the real batch and the real 4 logits.  (If the consumer can
    # take the lane-dense (B, 128) slab directly, skip this slice.)
    return out[:B, :num_classes]


if __name__ == "__main__":
    # Small, deterministic synthetic setup.
    #   vocab=16, input_size (= embedding dim) = 32, hidden_size = 32
    #   batch = 8, seq = 8
    V, D, H = 16, 32, 32
    B, S = 8, 8

    key = jax.random.PRNGKey(0)
    k_emb, k_w1, k_b1, k_w2, k_b2, k_x = jax.random.split(key, 6)

    # nn.Embedding.from_pretrained(weight)
    emb_table = jax.random.normal(k_emb, (V, D), dtype=jnp.float32)

    # nn.Linear(input_size, hidden_size): stored as (in, out), transpose of torch.
    w1 = jax.random.normal(k_w1, (D, H), dtype=jnp.float32) * (1.0 / jnp.sqrt(D))
    b1 = jax.random.normal(k_b1, (1, H), dtype=jnp.float32) * 0.1
    # nn.Linear(hidden_size, 4)
    w2 = jax.random.normal(k_w2, (H, 4), dtype=jnp.float32) * (1.0 / jnp.sqrt(H))
    b2 = jax.random.normal(k_b2, (1, 4), dtype=jnp.float32) * 0.1

    # Token indices (all in [0, V), so the bias-slot column V is never hit).
    x_ids = jax.random.randint(k_x, (B, S), 0, V, dtype=jnp.int32)
    assert bool(jnp.all((x_ids >= 0) & (x_ids < V))), "token ids out of range"

    # One-time weight folding (inference-style; done outside the hot path).
    W1_full, W2_full, bias_col = fold_params(emb_table, w1, b1, w2, b2)

    out = dense_network_forward(x_ids, W1_full, W2_full, bias_col)
    out = jax.block_until_ready(out)

    # Pure-JAX reference of the ORIGINAL (unfused) forward pass.
    ref = jnp.take(emb_table, x_ids, axis=0).astype(jnp.float32).sum(axis=1)
    ref = jnp.maximum(ref @ w1 + b1, 0.0) @ w2 + b2

    assert out.shape == (B, 4)
    assert jnp.allclose(out, ref, atol=1e-4, rtol=1e-4)

    print("KERNEL_OK")
</pallas_src>

<mosaic_0001>
module attributes {stable_mosaic.version = 11 : i64} {
  func.func @dense_network_kernel(%arg0: i32, %arg1: memref<8x8xi32, #tpu.memory_space<vmem>>, %arg2: memref<128x128xf32, #tpu.memory_space<vmem>>, %arg3: memref<128x128xf32, #tpu.memory_space<vmem>>, %arg4: memref<8x128xf32, #tpu.memory_space<vmem>>) attributes {dimension_semantics = [#tpu.dimension_semantics<parallel>], iteration_bounds = array<i64: 1>, scalar_prefetch = 0 : i64, scratch_operands = 0 : i64, tpu.core_type = #tpu.core_type<tc>, window_params = [{transform_indices = @transform_0, window_bounds = array<i64: 8, 8>}, {pipeline_mode = #tpu.pipeline_mode<synchronous>, transform_indices = @transform_1, window_bounds = array<i64: 128, 128>}, {pipeline_mode = #tpu.pipeline_mode<synchronous>, transform_indices = @transform_2, window_bounds = array<i64: 128, 128>}, {transform_indices = @transform_3, window_bounds = array<i64: 8, 128>}]} {
    %c0 = arith.constant 0 : index
    %c0_0 = arith.constant 0 : index
    %0 = vector.load %arg1[%c0, %c0_0] : memref<8x8xi32, #tpu.memory_space<vmem>>, vector<8x8xi32>
    %1 = tpu.iota {dimensions = array<i32: 1>} : vector<8x128xi32>
    %c16_i32 = arith.constant 16 : i32
    %2 = vector.broadcast %c16_i32 : i32 to vector<8x128xi32>
    %3 = arith.cmpi eq, %1, %2 : vector<8x128xi32>
    %4 = arith.extui %3 : vector<8x128xi1> to vector<8x128xi32>
    %5 = vector.extract_strided_slice %0 {offsets = [0, 0], sizes = [8, 1], strides = [1, 1]} : vector<8x8xi32> to vector<8x1xi32>
    %6 = vector.broadcast %5 : vector<8x1xi32> to vector<8x128xi32>
    %7 = arith.cmpi eq, %6, %1 : vector<8x128xi32>
    %8 = arith.extui %7 : vector<8x128xi1> to vector<8x128xi32>
    %9 = arith.addi %4, %8 : vector<8x128xi32>
    %10 = vector.extract_strided_slice %0 {offsets = [0, 1], sizes = [8, 1], strides = [1, 1]} : vector<8x8xi32> to vector<8x1xi32>
    %11 = vector.broadcast %10 : vector<8x1xi32> to vector<8x128xi32>
    %12 = arith.cmpi eq, %11, %1 : vector<8x128xi32>
    %13 = arith.extui %12 : vector<8x128xi1> to vector<8x128xi32>
    %14 = arith.addi %9, %13 : vector<8x128xi32>
    %15 = vector.extract_strided_slice %0 {offsets = [0, 2], sizes = [8, 1], strides = [1, 1]} : vector<8x8xi32> to vector<8x1xi32>
    %16 = vector.broadcast %15 : vector<8x1xi32> to vector<8x128xi32>
    %17 = arith.cmpi eq, %16, %1 : vector<8x128xi32>
    %18 = arith.extui %17 : vector<8x128xi1> to vector<8x128xi32>
    %19 = arith.addi %14, %18 : vector<8x128xi32>
    %20 = vector.extract_strided_slice %0 {offsets = [0, 3], sizes = [8, 1], strides = [1, 1]} : vector<8x8xi32> to vector<8x1xi32>
    %21 = vector.broadcast %20 : vector<8x1xi32> to vector<8x128xi32>
    %22 = arith.cmpi eq, %21, %1 : vector<8x128xi32>
    %23 = arith.extui %22 : vector<8x128xi1> to vector<8x128xi32>
    %24 = arith.addi %19, %23 : vector<8x128xi32>
    %25 = vector.extract_strided_slice %0 {offsets = [0, 4], sizes = [8, 1], strides = [1, 1]} : vector<8x8xi32> to vector<8x1xi32>
    %26 = vector.broadcast %25 : vector<8x1xi32> to vector<8x128xi32>
    %27 = arith.cmpi eq, %26, %1 : vector<8x128xi32>
    %28 = arith.extui %27 : vector<8x128xi1> to vector<8x128xi32>
    %29 = arith.addi %24, %28 : vector<8x128xi32>
    %30 = vector.extract_strided_slice %0 {offsets = [0, 5], sizes = [8, 1], strides = [1, 1]} : vector<8x8xi32> to vector<8x1xi32>
    %31 = vector.broadcast %30 : vector<8x1xi32> to vector<8x128xi32>
    %32 = arith.cmpi eq, %31, %1 : vector<8x128xi32>
    %33 = arith.extui %32 : vector<8x128xi1> to vector<8x128xi32>
    %34 = arith.addi %29, %33 : vector<8x128xi32>
    %35 = vector.extract_strided_slice %0 {offsets = [0, 6], sizes = [8, 1], strides = [1, 1]} : vector<8x8xi32> to vector<8x1xi32>
    %36 = vector.broadcast %35 : vector<8x1xi32> to vector<8x128xi32>
    %37 = arith.cmpi eq, %36, %1 : vector<8x128xi32>
    %38 = arith.extui %37 : vector<8x128xi1> to vector<8x128xi32>
    %39 = arith.addi %34, %38 : vector<8x128xi32>
    %40 = vector.extract_strided_slice %0 {offsets = [0, 7], sizes = [8, 1], strides = [1, 1]} : vector<8x8xi32> to vector<8x1xi32>
    %41 = vector.broadcast %40 : vector<8x1xi32> to vector<8x128xi32>
    %42 = arith.cmpi eq, %41, %1 : vector<8x128xi32>
    %43 = arith.extui %42 : vector<8x128xi1> to vector<8x128xi32>
    %44 = arith.addi %39, %43 : vector<8x128xi32>
    %45 = arith.sitofp %44 : vector<8x128xi32> to vector<8x128xf32>
    %c0_1 = arith.constant 0 : index
    %c0_2 = arith.constant 0 : index
    %46 = vector.load %arg2[%c0_1, %c0_2] : memref<128x128xf32, #tpu.memory_space<vmem>>, vector<128x128xf32>
    %cst = arith.constant dense<0.000000e+00> : vector<8x128xf32>
    %47 = tpu.matmul %45, %46, %cst {dimension_numbers = #tpu.dot_dimension_numbers<[1], [0], [0], [1], [0, 0, 1, 1], [], []>} : vector<8x128xf32>, vector<128x128xf32>, vector<8x128xf32> -> vector<8x128xf32>
    %cst_3 = arith.constant 0.000000e+00 : f32
    %48 = vector.broadcast %cst_3 : f32 to vector<8x128xf32>
    %49 = arith.maximumf %47, %48 : vector<8x128xf32>
    %c0_4 = arith.constant 0 : index
    %c0_5 = arith.constant 0 : index
    %50 = vector.load %arg3[%c0_4, %c0_5] : memref<128x128xf32, #tpu.memory_space<vmem>>, vector<128x128xf32>
    %cst_6 = arith.constant dense<0.000000e+00> : vector<8x128xf32>
    %51 = tpu.matmul %49, %50, %cst_6 {dimension_numbers = #tpu.dot_dimension_numbers<[1], [0], [0], [1], [0, 0, 1, 1], [], []>} : vector<8x128xf32>, vector<128x128xf32>, vector<8x128xf32> -> vector<8x128xf32>
    %c0_7 = arith.constant 0 : index
    %c0_8 = arith.constant 0 : index
    %52 = vector.load %arg4[%c0_7, %c0_8] : memref<8x128xf32, #tpu.memory_space<vmem>>, vector<8x128xf32>
    tpu.vector_store %arg4[%c0_7, %c0_8], %51 {strides = array<i32>} : memref<8x128xf32, #tpu.memory_space<vmem>>, vector<8x128xf32>,
    return
  }
  func.func @transform_0(%arg0: i32) -> (i32, i32) {
    %c0_i32 = arith.constant 0 : i32
    %c0_i32_0 = arith.constant 0 : i32
    return %arg0, %c0_i32 : i32, i32
  }
  func.func @transform_1(%arg0: i32) -> (i32, i32) {
    %c0_i32 = arith.constant 0 : i32
    %c0_i32_0 = arith.constant 0 : i32
    %c0_i32_1 = arith.constant 0 : i32
    return %c0_i32, %c0_i32_0 : i32, i32
  }
  func.func @transform_2(%arg0: i32) -> (i32, i32) {
    %c0_i32 = arith.constant 0 : i32
    %c0_i32_0 = arith.constant 0 : i32
    %c0_i32_1 = arith.constant 0 : i32
    return %c0_i32, %c0_i32_0 : i32, i32
  }
  func.func @transform_3(%arg0: i32) -> (i32, i32) {
    %c0_i32 = arith.constant 0 : i32
    %c0_i32_0 = arith.constant 0 : i32
    return %arg0, %c0_i32 : i32, i32
  }
}

</mosaic_0001>

<bundles_post_ra>
// kernel: tpu_custom_call.1
= control target key start
LH: loop header
LB: loop body
LE: loop exit
PB: predicated region body
PF: predicated region fallthrough
CT: control target
= control target key end

     0   :  { %8 = vsyncpa [#allocation3], 0  ;;  %s387_s0 = inlined_call_operand.hbm [shape: s32[8,8], index: 0, kind: input, shape index: {}]   ;;  %s388_s1 = inlined_call_operand.hbm [shape: f32[128,128], index: 1, kind: input, shape index: {}]   ;;  %s389_s2 = inlined_call_operand.hbm [shape: f32[128,128], index: 2, kind: input, shape index: {}]   ;;  %s390_s3 = inlined_call_operand.hbm [shape: f32[8,128], index: 3, kind: output, shape index: {}]  }
   0x1   :  { %9 = vsyncpa [#allocation6], 0  ;;  %s26_s14 = sshll.u32 %s388_s1, 4  ;;  %s27_s14 = int_to_ptr.hbm [resolvable:$true] %s26_s14 }
   0x2   :  { %10 = vsyncpa [#allocation4], 0  ;;  %s331_s15 = smov [#allocation5]   ;;  %s16_s19 = sshll.u32 %s387_s0, 4  ;;  %s17_s19 = int_to_ptr.hbm [resolvable:$true] %s16_s19 }
   0x3   :  { %s28_s16 = sshll.u32 %s331_s15, 4  ;;  %s332_s20 = smov 128   ;;  %s29_s16 = int_to_ptr.vmem [resolvable:$true] %s28_s16 }
   0x4   :  { %s333_s21 = smov 8   ;;  %s334_s22 = smov [#allocation2]  }
   0x5   :  { %34 = dma.hbm_to_vmem [thread:$0]  %s27_s14, 2048, %s29_s16, [#allocation6], %s332_s20, %s332_s20, %s333_s21  }
   0x6   :  { %s18_s23 = sshll.u32 %s334_s22, 4  ;;  %s39_s26 = sshll.u32 %s389_s2, 4  ;;  %s19_s23 = int_to_ptr.vmem [resolvable:$true] %s18_s23  ;;  %s40_s26 = int_to_ptr.hbm [resolvable:$true] %s39_s26 }
   0x7   :  { %21 = dma.hbm_to_vmem [thread:$0]  %s17_s19, 128, %s19_s23, [#allocation3]  }
   0x8   :  { %s335_s1 = smov [#allocation7]  }
   0x9   :  { %s41_s27 = sshll.u32 %s335_s1, 4  ;;  %s42_s27 = int_to_ptr.vmem [resolvable:$true] %s41_s27 }
   0xa   :  { %47 = dma.hbm_to_vmem [thread:$0]  %s40_s26, 2048, %s42_s27, [#allocation6], %s332_s20, %s332_s20, %s333_s21  }
   0xb   :  { %325 = dma.done.wait [#allocation3], 128  }
   0xc   :  { %326 = vsyncadd [#allocation3], 4294967168 }
   0xd   :  { %327 = dma.done.wait [#allocation6], 4096  }
   0xe   :  { %328 = vsyncadd [#allocation6], 4294963200  ;;  %v336_v0 = vmov 0   ;;  %v337_v1 = vmov 2   ;;  %v338_v2 = vmov 4   ;;  %v60_v3 = vld [vmem:[#allocation2] sm:$0xff]  ;;  %v61_v26 = vlaneseq }
   0xf   :  { %220 = vset.pattern.permute.xlu0 %v336_v0  ;;  %222 = vset.pattern.permute.xlu1 %v337_v1  ;;  %v129_v4 = vld [vmem:[#allocation5 + $0x78] sm:$0xff]  ;;  %v128_v5 = vld [vmem:[#allocation5 + $0x70] sm:$0xff]  ;;  %v339_v6 = vmov 1   ;;  %v340_v7 = vmov 3   ;;  %v341_v8 = vmov 5   ;;  %v342_v9 = vmov 6  }
  0x10   :  { %224 = vset.pattern.permute.xlu2 %v338_v2  ;;  %66 = vperm.xlu0 %220, %v60_v3   ;;  %v343_v10 = vmov 7   ;;  %v127_v11 = vld [vmem:[#allocation5 + $0x68] sm:$0xff]  ;;  %v126_v12 = vld [vmem:[#allocation5 + $0x60] sm:$0xff]  ;;  %v125_v13 = vld [vmem:[#allocation5 + $0x58] sm:$0xff]  ;;  %v62_v30 = vand.u32 127, %v61_v26  ;;  %s344_s0 = smov [#allocation8]  }
  0x11   :  { %78 = vperm.xlu1 %222, %v60_v3   ;;  %90 = vperm.xlu2 %224, %v60_v3   ;;  %v124_v14 = vld [vmem:[#allocation5 + $0x50] sm:$0xff]  ;;  %v123_v15 = vld [vmem:[#allocation5 + $0x48] sm:$0xff]  ;;  %v122_v16 = vld [vmem:[#allocation5 + $0x40] sm:$0xff]  ;;  %s193_s2 = sshll.u32 %s344_s0, 4  ;;  %s195_s30 = sshll.u32 %s390_s3, 4  ;;  %s194_s2 = int_to_ptr.vmem [resolvable:$true] %s193_s2  ;;  %s196_s30 = int_to_ptr.hbm [resolvable:$true] %s195_s30 }
  0x12   :  { %130 = vmatpush.msra.mxu0 %v129_v4  ;;  %v121_v17 = vld [vmem:[#allocation5 + $0x38] sm:$0xff]  ;;  %v120_v18 = vld [vmem:[#allocation5 + $0x30] sm:$0xff]  ;;  %v119_v19 = vld [vmem:[#allocation5 + $0x28] sm:$0xff]  ;;  %vm63_vm0 = vcmp.eq.s32.totalorder %v62_v30, 16 }
  0x13   :  { %v118_v20 = vld [vmem:[#allocation5 + $0x20] sm:$0xff]  ;;  %v117_v21 = vld [vmem:[#allocation5 + $0x18] sm:$0xff]  ;;  %v116_v22 = vld [vmem:[#allocation5 + $0x10] sm:$0xff]  ;;  %v64_v38 = vsel %vm63_vm0, 1, %v336_v0 }
  0x14   :  { %131 = vmatpush.msra.mxu0 %v128_v5  ;;  %v115_v23 = vld [vmem:[#allocation5 + $0x8] sm:$0xff]  ;;  %v114_v24 = vld [vmem:[#allocation5] sm:$0xff]  ;;  %v166_v27 = vld [vmem:[#allocation7 + $0x78] sm:$0xff] }
  0x15   :  { %v165_v28 = vld [vmem:[#allocation7 + $0x70] sm:$0xff]  ;;  %167 = vmatpush.msra.mxu1 %v166_v27  ;;  %v164_v29 = vld [vmem:[#allocation7 + $0x68] sm:$0xff]  ;;  %v163_v33 = vld [vmem:[#allocation7 + $0x60] sm:$0xff] }
  0x16   :  { %132 = vmatpush.msra.mxu0 %v127_v11  ;;  %v162_v34 = vld [vmem:[#allocation7 + $0x58] sm:$0xff]  ;;  %v161_v35 = vld [vmem:[#allocation7 + $0x50] sm:$0xff]  ;;  %v160_v37 = vld [vmem:[#allocation7 + $0x48] sm:$0xff] }
  0x17   :  { %168 = vmatpush.msra.mxu1 %v165_v28  ;;  %v159_v40 = vld [vmem:[#allocation7 + $0x40] sm:$0xff]  ;;  %v158_v44 = vld [vmem:[#allocation7 + $0x38] sm:$0xff]  ;;  %v157_v47 = vld [vmem:[#allocation7 + $0x30] sm:$0xff] }
  0x18   :  { %221 = vset.pattern.permute.xlu0 %v339_v6  ;;  %133 = vmatpush.msra.mxu0 %v126_v12  ;;  %v156_v50 = vld [vmem:[#allocation7 + $0x28] sm:$0xff]  ;;  %v155_v54 = vld [vmem:[#allocation7 + $0x20] sm:$0xff]  ;;  %v154_v58 = vld [vmem:[#allocation7 + $0x18] sm:$0xff] }
  0x19   :  { %223 = vset.pattern.permute.xlu1 %v340_v7  ;;  %72 = vperm.xlu0 %221, %v60_v3   ;;  %v153_v62 = vld [vmem:[#allocation7 + $0x10] sm:$0xff]  ;;  %v152_v4 = vld [vmem:[#allocation7 + $0x8] sm:$0xff]  ;;  %v151_v5 = vld [vmem:[#allocation7] sm:$0xff] }
  0x1a   :  { %84 = vperm.xlu1 %223, %v60_v3   ;;  %225 = vset.pattern.permute.xlu2 %v341_v8 }
  0x1b   :  { %96 = vperm.xlu2 %225, %v60_v3   ;;  %134 = vmatpush.msra.mxu0 %v125_v13 }
  0x1c   :  { %169 = vmatpush.msra.mxu1 %v164_v29 }
  0x1d   :  { %135 = vmatpush.msra.mxu0 %v124_v14 }
  0x1e   :  { %170 = vmatpush.msra.mxu1 %v163_v33 }
  0x1f   :  { %136 = vmatpush.msra.mxu0 %v123_v15 }
  0x20   :  { %171 = vmatpush.msra.mxu1 %v162_v34 }
  0x21   :  { %228 = vset.pattern.permute.xlu0 %v343_v10  ;;  %137 = vmatpush.msra.mxu0 %v122_v16 }
  0x22   :  { %226 = vset.pattern.permute.xlu1 %v342_v9  ;;  %172 = vmatpush.msra.mxu1 %v161_v35 }
  0x23   :  { %102 = vperm.xlu1 %226, %v60_v3   ;;  %227 = vset.pattern.permute.xlu2 %v343_v10 }
  0x24   :  { %108 = vperm.xlu2 %227, %v60_v3   ;;  %138 = vmatpush.msra.mxu0 %v121_v17 }
  0x25   :  { %173 = vmatpush.msra.mxu1 %v160_v37 }
  0x26   :  { %139 = vmatpush.msra.mxu0 %v120_v18 }
  0x27   :  { %174 = vmatpush.msra.mxu1 %v159_v40 }
  0x28   :  { %140 = vmatpush.msra.mxu0 %v119_v19 }
  0x29   :  { %175 = vmatpush.msra.mxu1 %v158_v44 }
  0x2a   :  { %141 = vmatpush.msra.mxu0 %v118_v20 }
  0x2b   :  { %176 = vmatpush.msra.mxu1 %v157_v47 }
  0x2c   :  { %142 = vmatpush.msra.mxu0 %v117_v21 }
  0x2d   :  { %177 = vmatpush.msra.mxu1 %v156_v50 }
  0x2e   :  { %143 = vmatpush.msra.mxu0 %v116_v22 }
  0x2f   :  { %178 = vmatpush.msra.mxu1 %v155_v54 }
  0x30   :  { %144 = vmatpush.msra.mxu0 %v115_v23 }
  0x31   :  { %179 = vmatpush.msra.mxu1 %v154_v58 }
  0x32   :  { %145 = vmatpush.msra.mxu0 %v114_v24 }
  0x33   :  { %180 = vmatpush.msra.mxu1 %v153_v62 }
  0x35   :  { %181 = vmatpush.msra.mxu1 %v152_v4 }
  0x37   :  { %182 = vmatpush.msra.mxu1 %v151_v5 }
  0x6b   :  { %v91_v25 = vpop.permute.xlu2 %90 }
  0x6c   :  { %vm92_vm5 = vcmp.eq.s32.totalorder %v91_v25, %v62_v30 }
  0x6d   :  { %v93_v55 = vsel %vm92_vm5, 1, %v336_v0 }
  0x75   :  { %v97_v36 = vpop.permute.xlu2 %96 }
  0x76   :  { %vm98_vm6 = vcmp.eq.s32.totalorder %v97_v36, %v62_v30 }
  0x77   :  { %v99_v59 = vsel %vm98_vm6, 1, %v336_v0 }
  0x7e   :  { %v109_v52 = vpop.permute.xlu2 %108 }
  0x7f   :  { %vm110_vm7 = vcmp.eq.s32.totalorder %v109_v52, %v62_v30 }
  0x80   :  { %v111_v63 = vsel %vm110_vm7, 1, %v336_v0 }
  0x82   :  { %v67_v31 = vpop.permute.xlu0 %66 }
  0x83   :  { %v79_v32 = vpop.permute.xlu1 %78  ;;  %vm68_vm1 = vcmp.eq.s32.totalorder %v67_v31, %v62_v30 }
  0x84   :  { %v69_v39 = vsel %vm68_vm1, 1, %v336_v0  ;;  %vm80_vm2 = vcmp.eq.s32.totalorder %v79_v32, %v62_v30 }
  0x85   :  { %v70_v43 = vadd.s32 %v69_v39, %v64_v38  ;;  %v81_v48 = vsel %vm80_vm2, 1, %v336_v0 }
  0x8b   :  { %v73_v41 = vpop.permute.xlu0 %72 }
  0x8c   :  { %v85_v42 = vpop.permute.xlu1 %84  ;;  %vm74_vm3 = vcmp.eq.s32.totalorder %v73_v41, %v62_v30 }
  0x8d   :  { %v75_v45 = vsel %vm74_vm3, 1, %v336_v0  ;;  %vm86_vm4 = vcmp.eq.s32.totalorder %v85_v42, %v62_v30 }
  0x8e   :  { %v76_v46 = vadd.s32 %v75_v45, %v70_v43  ;;  %v87_v51 = vsel %vm86_vm4, 1, %v336_v0 }
  0x90   :  { %v82_v49 = vadd.s32 %v81_v48, %v76_v46 }
  0x92   :  { %v88_v53 = vadd.s32 %v87_v51, %v82_v49 }
  0x94   :  { %v94_v56 = vadd.s32 %v93_v55, %v88_v53 }
  0x95   :  { %v103_v57 = vpop.permute.xlu1 %102 }
  0x96   :  { %vm104_vm8 = vcmp.eq.s32.totalorder %v103_v57, %v62_v30  ;;  %v100_v60 = vadd.s32 %v99_v59, %v94_v56 }
  0x97   :  { %v105_v61 = vsel %vm104_vm8, 1, %v336_v0 }
  0x98   :  { %v106_v1 = vadd.s32 %v105_v61, %v100_v60 }
  0x9a   :  { %v112_v2 = vadd.s32 %v111_v63, %v106_v1 }
  0x9c   :  { %v113_v3 = vcvt.s32.f32 %v112_v2 }
  0x9e   :  { %146 = vmatmul.f32.vlgmr.msra.gmra.mxu0 %v113_v3 }
 0x11b   :  { %v147_v6 = vpop.f32.mrf.mxu0 }
 0x11c   :  { %v150_v7 = vmax.f32 %v147_v6, 0.0 }
 0x11e   :  { %183 = vmatmul.f32.vlgmr.msra.gmra.mxu1 %v150_v7 }
 0x19b   :  { %v184_v0 = vpop.f32.mrf.mxu1 }
 0x19c   :  { %187 = vst [vmem:[#allocation8] sm:$0xff] %v184_v0 }
 0x19d   :  { %198 = dma.vmem_to_hbm [thread:$0]  %s194_s2, 128, %s196_s30, [#allocation4]  }
 0x19e   :  { %329 = dma.done.wait [#allocation4], 128  }
 0x19f   :  { %330 = vsyncadd [#allocation4], 4294967168 }
 0x1a0   :  { %203 = vsyncpa [#allocation3], 1 }
 0x1a1   :  { %204 = vsyncpa [#allocation6], 1 }
 0x1a2   :  { %205 = vsyncpa [#allocation4], 1 }

</bundles_post_ra>
